<compile_context>
chip_gen: v7x
topology: tpu7x:2x2x1
jax: 0.10.0
libtpu: 0.0.40
codegen_flags: <defaults>
</compile_context>

<pallas_src>
import jax
import jax.numpy as jnp
from jax.experimental import pallas as pl
from jax.experimental.pallas import tpu as pltpu

_MIB = 1024 * 1024


# ----------------------------------------------------------------------------
# Pallas kernel: per-channel modulation  out = x * scale + shift
# scale/shift broadcast against x along whichever axis is size-1:
#   [C, 1]  vs  [C, ts]   (spatial-on-lanes path)
#   [1, C]  vs  [S, C]    (lane-dense channel path)
# ----------------------------------------------------------------------------
def _modulate_kernel(scale_ref, shift_ref, x_ref, o_ref):
    xv = x_ref[...].astype(jnp.float32)              # math in f32 (bf16-safe)
    o_ref[...] = (xv * scale_ref[...] + shift_ref[...]).astype(o_ref.dtype)


# ----------------------------------------------------------------------------
# Generation-aware tiling helpers
# ----------------------------------------------------------------------------
def _tpu_generation():
    """Best-effort TPU generation from device_kind; 0 if unknown (conservative)."""
    try:
        kind = jax.devices()[0].device_kind.lower()
    except Exception:
        return 0
    if "7x" in kind or "v7" in kind:
        return 7
    for g in (6, 5, 4):
        if f"v{g}" in kind:
            return g
    return 0


def _vmem_budgets(gen):
    """(tile_budget_bytes, vmem_limit_bytes). tile_budget already accounts for
    the x4 factor (in + out tiles, each double-buffered by the pipeline)."""
    if gen >= 7:          # v7x: 64 MiB physical VMEM per TensorCore
        return 20 * _MIB, 40 * _MIB
    if gen == 6:          # v6e: 128 MiB physical, 32 MiB default scoped
        return 24 * _MIB, 48 * _MIB
    return 12 * _MIB, 32 * _MIB   # v5e / unknown: conservative


def _pick_spatial_tile(spatial, channels, itemsize, budget, min_steps=1):
    """Largest multiple-of-128 divisor of `spatial` (itself a multiple of 128)
    whose double-buffered in+out tiles fit `budget`, honoring a minimum number
    of spatial grid steps (used to feed both v7x TensorCores when B == 1)."""
    per_lane = channels * itemsize * 4            # in + out, 2 pipeline bufs each
    max_ts = max(128, (budget // per_lane) // 128 * 128)
    if min_steps > 1:
        max_ts = min(max_ts, max(128, (spatial // min_steps) // 128 * 128))
    t = min(max_ts, spatial)
    while t > 128:
        if spatial % t == 0:
            return t
        t -= 128
    return 128


# ----------------------------------------------------------------------------
# pallas_call wrappers for the two layouts
# ----------------------------------------------------------------------------
def _modulate_spatial_lanes(x3, scale, shift, *, gen, tile_budget, vmem_limit):
    """x3: [B, C, S] with S % 128 == 0.  scale/shift: [B, C] f32."""
    B, C, S = x3.shape
    itemsize = jnp.dtype(x3.dtype).itemsize
    min_steps = 2 if (gen >= 7 and B == 1 and S >= 256) else 1
    ts = _pick_spatial_tile(S, C, itemsize, tile_budget, min_steps)
    grid = (B, S // ts)
    scale3 = scale.reshape(B, C, 1)
    shift3 = shift.reshape(B, C, 1)
    return pl.pallas_call(
        _modulate_kernel,
        out_shape=jax.ShapeDtypeStruct((B, C, S), x3.dtype),
        grid=grid,
        in_specs=[
            pl.BlockSpec((None, C, 1), lambda b, s: (b, 0, 0)),    # scale[b]
            pl.BlockSpec((None, C, 1), lambda b, s: (b, 0, 0)),    # shift[b]
            pl.BlockSpec((None, C, ts), lambda b, s: (b, 0, s)),   # x tile
        ],
        out_specs=pl.BlockSpec((None, C, ts), lambda b, s: (b, 0, s)),
        compiler_params=pltpu.CompilerParams(
            dimension_semantics=("parallel", "parallel"),
            vmem_limit_bytes=vmem_limit),
    )(scale3, shift3, x3)


def _modulate_channel_lanes(xsc, scale, shift, *, vmem_limit):
    """xsc: [B, S, C] with C % 128 == 0 (lane-dense channels; small feature maps)."""
    B, S, C = xsc.shape
    scale3 = scale.reshape(B, 1, C)
    shift3 = shift.reshape(B, 1, C)
    return pl.pallas_call(
        _modulate_kernel,
        out_shape=jax.ShapeDtypeStruct((B, S, C), xsc.dtype),
        grid=(B,),
        in_specs=[
            pl.BlockSpec((None, 1, C), lambda b: (b, 0, 0)),
            pl.BlockSpec((None, 1, C), lambda b: (b, 0, 0)),
            pl.BlockSpec((None, S, C), lambda b: (b, 0, 0)),
        ],
        out_specs=pl.BlockSpec((None, S, C), lambda b: (b, 0, 0)),
        compiler_params=pltpu.CompilerParams(
            dimension_semantics=("parallel",),
            vmem_limit_bytes=vmem_limit),
    )(scale3, shift3, xsc)


# ----------------------------------------------------------------------------
# Public forward (PyTorch ApplyStyle semantics)
# ----------------------------------------------------------------------------
def apply_style_forward(x, latent, params, *, slope=0.2):
    """x: [B, C, H, W], latent: [B, K] -> [B, C, H, W]."""
    B, C, H, W = x.shape
    S = H * W
    itemsize = jnp.dtype(x.dtype).itemsize
    gen = _tpu_generation()
    tile_budget, vmem_limit = _vmem_budgets(gen)

    # --- tiny FC (style) in f32 / HIGHEST: exact parity with the reference ---
    # (B*2C values; its HBM round-trip is noise, per the perf review.)
    w_eff = params["weight"].astype(jnp.float32) * params["w_lrmul"]   # [2C, K]
    b_eff = params["bias"].astype(jnp.float32) * params["b_lrmul"]     # [2C]
    style = jnp.dot(latent.astype(jnp.float32), w_eff.T,
                    precision=jax.lax.Precision.HIGHEST) + b_eff       # [B, 2C]
    style = jnp.where(style >= 0, style, slope * style)                # leaky_relu(0.2)
    scale = style[:, :C] + 1.0                                         # [B, C]
    shift = style[:, C:]                                               # [B, C]

    if S % 128 == 0:
        # Main path: spatial on lanes (lane-dense, unmasked stores).
        out = _modulate_spatial_lanes(
            x.reshape(B, C, S), scale, shift,
            gen=gen, tile_budget=tile_budget, vmem_limit=vmem_limit)
        return out.reshape(B, C, H, W)

    if C % 128 == 0 and S * C * itemsize * 4 <= tile_budget:
        # Small / odd feature map with lane-sized channel count: channels on
        # lanes so stores stay lane-dense (the transpose is cheap layout
        # plumbing at these sizes).
        xsc = jnp.transpose(x.reshape(B, C, S), (0, 2, 1))             # [B, S, C]
        out = _modulate_channel_lanes(xsc, scale, shift, vmem_limit=vmem_limit)
        return jnp.transpose(out, (0, 2, 1)).reshape(B, C, H, W)

    # Fallback: pad spatial up to a multiple of 128, modulate, slice it back.
    s_pad = ((S + 127) // 128) * 128
    x3 = jnp.pad(x.reshape(B, C, S), ((0, 0), (0, 0), (0, s_pad - S)))
    out = _modulate_spatial_lanes(
        x3, scale, shift, gen=gen, tile_budget=tile_budget, vmem_limit=vmem_limit)
    return out[:, :, :S].reshape(B, C, H, W)


# ----------------------------------------------------------------------------
# Parameters (mirrors FC.__init__(latent_size, channels*2, gain=1.0, use_wscale))
# ----------------------------------------------------------------------------
def init_apply_style_params(key, latent_size, channels, *, gain=1.0,
                            use_wscale=True, lrmul=1.0):
    he_std = gain * latent_size ** (-0.5)
    if use_wscale:
        init_std = 1.0 / lrmul
        w_lrmul = he_std * lrmul
    else:
        init_std = he_std / lrmul
        w_lrmul = lrmul
    weight = jax.random.normal(key, (2 * channels, latent_size), jnp.float32) * init_std
    bias = jnp.zeros((2 * channels,), jnp.float32)      # PyTorch: zeros
    return {"weight": weight, "bias": bias,
            "w_lrmul": jnp.float32(w_lrmul), "b_lrmul": jnp.float32(lrmul)}


# ----------------------------------------------------------------------------
# Pure-JAX reference (direct transcription of the PyTorch forward)
# ----------------------------------------------------------------------------
def apply_style_reference(x, latent, params, *, slope=0.2):
    w_eff = params["weight"].astype(jnp.float32) * params["w_lrmul"]
    b_eff = params["bias"].astype(jnp.float32) * params["b_lrmul"]
    style = jnp.dot(latent.astype(jnp.float32), w_eff.T,
                    precision=jax.lax.Precision.HIGHEST) + b_eff
    style = jnp.where(style >= 0, style, slope * style)               # leaky_relu(0.2)
    B, C = x.shape[0], x.shape[1]
    style = style.reshape(B, 2, C, 1, 1)
    return x.astype(jnp.float32) * (style[:, 0] + 1.0) + style[:, 1]


if __name__ == "__main__":
    key = jax.random.PRNGKey(0)

    def run_case(case_key, B, C, H, W, K, dtype):
        kx, kl, kp = jax.random.split(case_key, 3)
        x = jax.random.normal(kx, (B, C, H, W), jnp.float32).astype(dtype)
        latent = jax.random.normal(kl, (B, K), jnp.float32)
        params = init_apply_style_params(kp, K, C, use_wscale=True)
        out = jax.block_until_ready(apply_style_forward(x, latent, params))
        assert out.shape == x.shape, (out.shape, x.shape)
        assert out.dtype == x.dtype, (out.dtype, x.dtype)
        ref = apply_style_reference(x, latent, params)
        tol = 1e-4 if dtype == jnp.float32 else 1e-1
        err = float(jnp.max(jnp.abs(out.astype(jnp.float32) - ref)))
        assert err < tol, f"case {(B, C, H, W, K, str(dtype))}: max abs err {err}"

    cases = [
        (2, 128, 16, 16, 32, jnp.float32),   # S=256: spatial-on-lanes main path
        (2, 128, 4, 4, 32, jnp.float32),     # S=16, C%128==0: lane-dense path
        (1, 48, 10, 12, 16, jnp.float32),    # ragged S=120: pad-and-slice fallback
        (2, 128, 16, 16, 32, jnp.bfloat16),  # bf16 I/O (math stays f32 in-kernel)
    ]
    keys = jax.random.split(key, len(cases))
    for ck, case in zip(keys, cases):
        run_case(ck, *case)

    print("KERNEL_OK")
</pallas_src>

<mosaic_0001>
module attributes {stable_mosaic.version = 11 : i64} {
  func.func @_modulate_kernel(%arg0: i32, %arg1: i32, %arg2: memref<1x128x1xf32, #tpu.memory_space<vmem>>, %arg3: memref<1x128x1xf32, #tpu.memory_space<vmem>>, %arg4: memref<1x128x256xf32, #tpu.memory_space<vmem>>, %arg5: memref<1x128x256xf32, #tpu.memory_space<vmem>>) attributes {dimension_semantics = [#tpu.dimension_semantics<parallel>, #tpu.dimension_semantics<parallel>], iteration_bounds = array<i64: 2, 1>, scalar_prefetch = 0 : i64, scratch_operands = 0 : i64, tpu.core_type = #tpu.core_type<tc>, window_params = [{transform_indices = @transform_0, window_bounds = array<i64: 1, 128, 1>}, {transform_indices = @transform_1, window_bounds = array<i64: 1, 128, 1>}, {transform_indices = @transform_2, window_bounds = array<i64: 1, 128, 256>}, {transform_indices = @transform_3, window_bounds = array<i64: 1, 128, 256>}]} {
    %c0 = arith.constant 0 : index
    %c0_0 = arith.constant 0 : index
    %c0_1 = arith.constant 0 : index
    %0 = vector.load %arg4[%c0, %c0_0, %c0_1] : memref<1x128x256xf32, #tpu.memory_space<vmem>>, vector<1x128x256xf32>
    %1 = vector.shape_cast %0 : vector<1x128x256xf32> to vector<128x256xf32>
    %c0_2 = arith.constant 0 : index
    %c0_3 = arith.constant 0 : index
    %c0_4 = arith.constant 0 : index
    %2 = vector.load %arg2[%c0_2, %c0_3, %c0_4] : memref<1x128x1xf32, #tpu.memory_space<vmem>>, vector<1x128x1xf32>
    %3 = vector.shape_cast %2 : vector<1x128x1xf32> to vector<128x1xf32>
    %4 = vector.broadcast %3 : vector<128x1xf32> to vector<128x256xf32>
    %5 = arith.mulf %1, %4 : vector<128x256xf32>
    %c0_5 = arith.constant 0 : index
    %c0_6 = arith.constant 0 : index
    %c0_7 = arith.constant 0 : index
    %6 = vector.load %arg3[%c0_5, %c0_6, %c0_7] : memref<1x128x1xf32, #tpu.memory_space<vmem>>, vector<1x128x1xf32>
    %7 = vector.shape_cast %6 : vector<1x128x1xf32> to vector<128x1xf32>
    %8 = vector.broadcast %7 : vector<128x1xf32> to vector<128x256xf32>
    %9 = arith.addf %5, %8 : vector<128x256xf32>
    %c0_8 = arith.constant 0 : index
    %c0_9 = arith.constant 0 : index
    %c0_10 = arith.constant 0 : index
    %10 = vector.load %arg5[%c0_8, %c0_9, %c0_10] : memref<1x128x256xf32, #tpu.memory_space<vmem>>, vector<1x128x256xf32>
    %11 = vector.shape_cast %10 : vector<1x128x256xf32> to vector<128x256xf32>
    %12 = vector.shape_cast %9 : vector<128x256xf32> to vector<1x128x256xf32>
    tpu.vector_store %arg5[%c0_8, %c0_9, %c0_10], %12 {strides = array<i32>} : memref<1x128x256xf32, #tpu.memory_space<vmem>>, vector<1x128x256xf32>,
    return
  }
  func.func @transform_0(%arg0: i32, %arg1: i32) -> (i32, i32, i32) {
    %c0_i32 = arith.constant 0 : i32
    %c0_i32_0 = arith.constant 0 : i32
    %c0_i32_1 = arith.constant 0 : i32
    return %arg0, %c0_i32, %c0_i32_0 : i32, i32, i32
  }
  func.func @transform_1(%arg0: i32, %arg1: i32) -> (i32, i32, i32) {
    %c0_i32 = arith.constant 0 : i32
    %c0_i32_0 = arith.constant 0 : i32
    %c0_i32_1 = arith.constant 0 : i32
    return %arg0, %c0_i32, %c0_i32_0 : i32, i32, i32
  }
  func.func @transform_2(%arg0: i32, %arg1: i32) -> (i32, i32, i32) {
    %c0_i32 = arith.constant 0 : i32
    %c0_i32_0 = arith.constant 0 : i32
    return %arg0, %c0_i32, %arg1 : i32, i32, i32
  }
  func.func @transform_3(%arg0: i32, %arg1: i32) -> (i32, i32, i32) {
    %c0_i32 = arith.constant 0 : i32
    %c0_i32_0 = arith.constant 0 : i32
    return %arg0, %c0_i32, %arg1 : i32, i32, i32
  }
}

</mosaic_0001>

<bundles_post_ra>
// kernel: tpu_custom_call.1
= control target key start
LH: loop header
LB: loop body
LE: loop exit
PB: predicated region body
PF: predicated region fallthrough
CT: control target
= control target key end

     0   :  { %8 = vsyncpa [#allocation3], 0  ;;  %s1124_s0 = inlined_call_operand.vmem [shape: f32[2,128,1], index: 0, kind: input, shape index: {}]   ;;  %s1125_s1 = inlined_call_operand.vmem [shape: f32[2,128,1], index: 1, kind: input, shape index: {}]   ;;  %s1126_s2 = inlined_call_operand.vmem [shape: f32[2,128,256], index: 2, kind: input, shape index: {}]   ;;  %s1127_s3 = inlined_call_operand.hbm [shape: f32[2,128,256], index: 3, kind: output, shape index: {}]  }
   0x1   :  { %10 = vsyncpa [#allocation3 + $0x1], 0  ;;  %s864_s12 = smov 0   ;;  %s866_s13 = smov 0  }
   0x2   :  { %s868_s14 = smov 0   ;;  %s870_s15 = smov 0  }
   0x3   :  { %s872_s16 = smov 0   ;;  %s874_s17 = smov 0  }
   0x4 LB: > { %s679_s18 = sadd.s32 4294967295, %s838_s17   ;;  %s680_s19 = sadd.s32 4294967294, %s838_s17   ;;  %s838_s17 = sphi %s874_s17, %s16_s17   ;;  %s834_s16 = sphi %s872_s16, %s1134_s16   ;;  %s830_s15 = sphi %s870_s15, %s1133_s15   ;;  %s826_s14 = sphi %s868_s14, %s1132_s14   ;;  %s822_s13 = sphi %s866_s13, %s1131_s13   ;;  %s818_s12 = sphi %s864_s12, %s1130_s12  }
   0x5   : > { %s28_s20 = sadd.s32 1, %s834_s16  ;;  %s117_s21 = sadd.s32 1, %s826_s14 }
   0x6   : > { %p30_p0 = scmp.ge.s32.totalorder %s28_s20, 2  ;;  %p127_p1 = scmp.ne.s32.totalorder %s826_s14, %s822_s13 }
   0x7   : > { %p128_p2 = scmp.eq.s32.totalorder %s679_s18, 1  ;;  %p133_p3 = scmp.ne.s32.totalorder %s822_s13, %s818_s12 }
   0x8   : > { %s1136_s20 = smov (%p30_p0, %s28_s20), 0  ;;  %p134_p5 = scmp.eq.s32.totalorder %s680_s19, 1 }
   0x9   : > { %p904_p4 = por %p128_p2, %p127_p1  ;;  %s112_s23 = ssub.s32 %s834_s16, %s1136_s20 }
   0xa   : > { %p683_p6 = scmp.ge.s32.totalorder %s838_s17, 1  ;;  %p115_p7 = scmp.eq.s32.totalorder %s112_s23, 0 }
   0xb   : > { %p911_p8 = por %p134_p5, %p133_p3  ;;  %p181_p9 = scmp.lt.s32.totalorder %s838_s17, 3 }
   0xc   : > { %s917_s25 = scalar_select %p115_p7, %s826_s14, %s117_s21  }
   0xd   : > { %p182_p10 = pnand %p683_p6, %p181_p9 }
   0xe   : > { %p219_p11 = scmp.lt.s32.totalorder (!%p182_p10), %s830_s15, 1  ;;  %v840_v0 = vmov (!%p182_p10), 0   ;;  %s216_s11 = sand.u32 (!%p182_p10), 1, %s822_s13  }
   0xf   : > { %185 = sbr.rel (%p182_p10) target bundleno = 233 (0xe9), region = 32  ;;  %759 = vset.pattern.permute.xlu1 (!%p182_p10), %v840_v0  ;;  %758 = vset.pattern.permute.xlu0 (!%p182_p10), %v840_v0  ;;  %s684_s18 = sshll.u32 (!%p182_p10), %s216_s11, 8 }
  0x10   : > { %s990_s19 = scalar_lea.vmem (!%p182_p10), [#allocation2], %s684_s18  ;;  %s699_s21 = sshll.u32 (!%p182_p10), %s830_s15, 12 }
  0x11   : > { %s576_s23 = sshll.u32 (!%p182_p10), %s990_s19, 4  ;;  %s1078_s28 = scalar_lea.sflag (!%p182_p10), [#allocation3], %s216_s11  ;;  %s1070_s23 = int_to_ptr.vmem [resolvable:$true] %s576_s23 }
  0x12   : > { %s760_s29 = scalar_lea.vmem (!%p182_p10), %s1070_s23, 4096 }
  0x13   : > { %p761_p12 = scmp.ne.s32.totalorder (!%p182_p10), %s1070_s23, %s760_s29 }
  0x15   : > { %p762_p13 = pnand (!%p182_p10), %p761_p12, %p904_p4 }
  0x16   : > { %s921_s26 = scalar_select %p219_p11, %s830_s15, 1 }
  0x17   : > { %p763_p0 = pneg %p762_p13 }
  0x18   : > { %s696_s27 = sshll.u32 %s921_s26, 7  ;;  %s698_s7 = sshll.u32 %s921_s26, 8 }
  0x19   : > { %s223_s30 = scalar_lea.vmem %s1124_s0, %s696_s27  ;;  %s934_s6 = scalar_lea.vmem %s1125_s1, %s696_s27 }
  0x1a   : > { %v274_v1 = vld [vmem:[%s223_s30 + $0x10] sm:$0xff]  ;;  %v272_v2 = vld [vmem:[%s223_s30] sm:$0xff]  ;;  %v275_v3 = vld [vmem:[%s223_s30 + $0x18] sm:$0xff]  ;;  %s968_s10 = scalar_lea.vmem %s1126_s2, %s698_s7  ;;  %s1068_s27 = scalar_lea.hbm %s1127_s3, %s699_s21 }
  0x1b   : > { %300 = vperm.xlu1 %759, %v274_v1   ;;  %290 = vperm.xlu0 %758, %v272_v2   ;;  %v273_v4 = vld [vmem:[%s223_s30 + $0x8] sm:$0xff]  ;;  %v276_v6 = vld [vmem:[%s223_s30 + $0x20] sm:$0xff]  ;;  %v279_v7 = vld [vmem:[%s223_s30 + $0x38] sm:$0xff] }
  0x1c   : > { %v277_v5 = vld [vmem:[%s223_s30 + $0x28] sm:$0xff]  ;;  %v278_v8 = vld [vmem:[%s223_s30 + $0x30] sm:$0xff]  ;;  %v280_v10 = vld [vmem:[%s223_s30 + $0x40] sm:$0xff] }
  0x1d   : > { %v281_v9 = vld [vmem:[%s223_s30 + $0x48] sm:$0xff]  ;;  %v283_v11 = vld [vmem:[%s223_s30 + $0x58] sm:$0xff]  ;;  %v282_v12 = vld [vmem:[%s223_s30 + $0x50] sm:$0xff] }
  0x1e   : > { %v285_v13 = vld [vmem:[%s223_s30 + $0x68] sm:$0xff]  ;;  %v284_v14 = vld [vmem:[%s223_s30 + $0x60] sm:$0xff]  ;;  %v287_v15 = vld [vmem:[%s223_s30 + $0x78] sm:$0xff] }
  0x1f   : > { %305 = vperm.xlu1 %759, %v275_v3   ;;  %295 = vperm.xlu0 %758, %v273_v4   ;;  %v286_v16 = vld [vmem:[%s223_s30 + $0x70] sm:$0xff]  ;;  %v401_v17 = vld [vmem:[%s934_s6 + $0x8] sm:$0xff]  ;;  %v400_v18 = vld [vmem:[%s934_s6] sm:$0xff]  ;;  %s841_s30 = smov [#allocation2]  }
  0x20   : > { %v403_v19 = vld [vmem:[%s934_s6 + $0x18] sm:$0xff]  ;;  %v402_v20 = vld [vmem:[%s934_s6 + $0x10] sm:$0xff]  ;;  %v405_v21 = vld [vmem:[%s934_s6 + $0x28] sm:$0xff]  ;;  %s764_s4 = sshll.u32 %s841_s30, 4  ;;  %s765_s4 = int_to_ptr.vmem [resolvable:$false] %s764_s4 }
  0x21   : > { %v404_v22 = vld [vmem:[%s934_s6 + $0x20] sm:$0xff]  ;;  %v407_v23 = vld [vmem:[%s934_s6 + $0x38] sm:$0xff]  ;;  %v406_v24 = vld [vmem:[%s934_s6 + $0x30] sm:$0xff]  ;;  %s766_s5 = scalar_lea.vmem %s765_s4, 8192  ;;  %p767_p1 = scmp.lt.s32.totalorder %s1070_s23, %s765_s4 }
  0x22   : > { %v409_v25 = vld [vmem:[%s934_s6 + $0x48] sm:$0xff]  ;;  %v408_v26 = vld [vmem:[%s934_s6 + $0x40] sm:$0xff]  ;;  %v411_v27 = vld [vmem:[%s934_s6 + $0x58] sm:$0xff]  ;;  %p768_p2 = scmp.lt.s32.totalorder %s766_s5, %s760_s29 }
  0x23   : > { %315 = vperm.xlu1 %759, %v277_v5   ;;  %310 = vperm.xlu0 %758, %v276_v6   ;;  %v410_v28 = vld [vmem:[%s934_s6 + $0x50] sm:$0xff]  ;;  %v413_v29 = vld [vmem:[%s934_s6 + $0x68] sm:$0xff]  ;;  %v412_v30 = vld [vmem:[%s934_s6 + $0x60] sm:$0xff] }
  0x24   : > { %v415_v31 = vld [vmem:[%s934_s6 + $0x78] sm:$0xff]  ;;  %v414_v32 = vld [vmem:[%s934_s6 + $0x70] sm:$0xff]  ;;  %v240_v47 = vld [vmem:[%s968_s10] sm:$0xff]  ;;  %p769_p3 = por %p768_p2, %p767_p1 }
  0x25   : > { %v241_v48 = vld [vmem:[%s968_s10 + $0x8] sm:$0xff]  ;;  %v242_v49 = vld [vmem:[%s968_s10 + $0x10] sm:$0xff]  ;;  %v243_v50 = vld [vmem:[%s968_s10 + $0x18] sm:$0xff] }
  0x26   : > { %v244_v53 = vld [vmem:[%s968_s10 + $0x20] sm:$0xff]  ;;  %v245_v58 = vld [vmem:[%s968_s10 + $0x28] sm:$0xff]  ;;  %v246_v59 = vld [vmem:[%s968_s10 + $0x30] sm:$0xff]  ;;  %p770_p5 = pnand %p769_p3, %p763_p0 }
  0x27   : > { %325 = vperm.xlu1 %759, %v279_v7   ;;  %320 = vperm.xlu0 %758, %v278_v8   ;;  %v247_v60 = vld [vmem:[%s968_s10 + $0x38] sm:$0xff]  ;;  %v250_v7 = vld [vmem:[%s968_s10 + $0x50] sm:$0xff] }
  0x28   : > { %v251_v8 = vld [vmem:[%s968_s10 + $0x58] sm:$0xff] }
  0x2b   : > { %335 = vperm.xlu1 %759, %v281_v9   ;;  %330 = vperm.xlu0 %758, %v280_v10   ;;  %v248_v9 = vld [vmem:[%s968_s10 + $0x40] sm:$0xff]  ;;  %v249_v10 = vld [vmem:[%s968_s10 + $0x48] sm:$0xff] }
  0x2f   : > { %345 = vperm.xlu1 %759, %v283_v11   ;;  %340 = vperm.xlu0 %758, %v282_v12  }
  0x33   : > { %355 = vperm.xlu1 %759, %v285_v13   ;;  %350 = vperm.xlu0 %758, %v284_v14  }
  0x37   : > { %365 = vperm.xlu1 %759, %v287_v15   ;;  %360 = vperm.xlu0 %758, %v286_v16  }
  0x3b   : > { %423 = vperm.xlu1 %759, %v401_v17   ;;  %418 = vperm.xlu0 %758, %v400_v18  }
  0x3f   : > { %433 = vperm.xlu1 %759, %v403_v19   ;;  %428 = vperm.xlu0 %758, %v402_v20  }
  0x43   : > { %443 = vperm.xlu1 %759, %v405_v21   ;;  %438 = vperm.xlu0 %758, %v404_v22   ;;  %v254_v21 = vld [vmem:[%s968_s10 + $0x70] sm:$0xff]  ;;  %v255_v22 = vld [vmem:[%s968_s10 + $0x78] sm:$0xff] }
  0x47   : > { %453 = vperm.xlu1 %759, %v407_v23   ;;  %448 = vperm.xlu0 %758, %v406_v24   ;;  %v252_v23 = vld [vmem:[%s968_s10 + $0x60] sm:$0xff]  ;;  %v253_v24 = vld [vmem:[%s968_s10 + $0x68] sm:$0xff] }
  0x4b   : > { %463 = vperm.xlu1 %759, %v409_v25   ;;  %458 = vperm.xlu0 %758, %v408_v26  }
  0x4f   : > { %473 = vperm.xlu1 %759, %v411_v27   ;;  %468 = vperm.xlu0 %758, %v410_v28  }
  0x53   : > { %483 = vperm.xlu1 %759, %v413_v29   ;;  %478 = vperm.xlu0 %758, %v412_v30  }
  0x57   : > { %493 = vperm.xlu1 %759, %v415_v31   ;;  %488 = vperm.xlu0 %758, %v414_v32  }
  0x9a   : > { %v301_v33 = vpop.permute.xlu1 %300  ;;  %v291_v34 = vpop.permute.xlu0 %290 }
  0x9b   : > { %v368_v54 = vmul.f32 %v291_v34, %v240_v47  ;;  %v369_v55 = vmul.f32 %v291_v34, %v241_v48  ;;  %v372_v3 = vmul.f32 %v301_v33, %v244_v53  ;;  %v373_v4 = vmul.f32 %v301_v33, %v245_v58  ;;  %v263_v58 = vld [vmem:[%s968_s10 + $0xb8] sm:$0xff] }
  0x9e   : > { %v306_v35 = vpop.permute.xlu1 %305  ;;  %v296_v36 = vpop.permute.xlu0 %295 }
  0x9f   : > { %v370_v56 = vmul.f32 %v296_v36, %v242_v49  ;;  %v371_v57 = vmul.f32 %v296_v36, %v243_v50  ;;  %v374_v5 = vmul.f32 %v306_v35, %v246_v59  ;;  %v375_v6 = vmul.f32 %v306_v35, %v247_v60  ;;  %v258_v35 = vld [vmem:[%s968_s10 + $0x90] sm:$0xff]  ;;  %v259_v36 = vld [vmem:[%s968_s10 + $0x98] sm:$0xff]  ;;  %v260_v59 = vld [vmem:[%s968_s10 + $0xa0] sm:$0xff] }
  0xa0   : > { %v261_v60 = vld [vmem:[%s968_s10 + $0xa8] sm:$0xff] }
  0xa2   : > { %v316_v37 = vpop.permute.xlu1 %315  ;;  %v311_v38 = vpop.permute.xlu0 %310 }
  0xa3   : > { %v378_v17 = vmul.f32 %v316_v37, %v250_v7  ;;  %v379_v18 = vmul.f32 %v316_v37, %v251_v8  ;;  %v376_v19 = vmul.f32 %v311_v38, %v248_v9  ;;  %v377_v20 = vmul.f32 %v311_v38, %v249_v10  ;;  %v256_v37 = vld [vmem:[%s968_s10 + $0x80] sm:$0xff]  ;;  %v257_v38 = vld [vmem:[%s968_s10 + $0x88] sm:$0xff] }
  0xa4   : > { %v264_v7 = vld [vmem:[%s968_s10 + $0xc0] sm:$0xff]  ;;  %v265_v8 = vld [vmem:[%s968_s10 + $0xc8] sm:$0xff] }
  0xa6   : > { %v952_v39 = vpop.permute.xlu1 %325  ;;  %v954_v40 = vpop.permute.xlu0 %320 }
  0xa7   : > { %v382_v31 = vmul.f32 %v952_v39, %v254_v21  ;;  %v383_v32 = vmul.f32 %v952_v39, %v255_v22  ;;  %v380_v33 = vmul.f32 %v954_v40, %v252_v23  ;;  %v381_v34 = vmul.f32 %v954_v40, %v253_v24 }
  0xaa   : > { %v956_v41 = vpop.permute.xlu1 %335  ;;  %v958_v42 = vpop.permute.xlu0 %330 }
  0xab   : > { %v386_v53 = vmul.f32 %v956_v41, %v258_v35 }
  0xae   : > { %v960_v43 = vpop.permute.xlu1 %345  ;;  %v962_v44 = vpop.permute.xlu0 %340 }
  0xb2   : > { %v970_v45 = vpop.permute.xlu1 %355  ;;  %v972_v46 = vpop.permute.xlu0 %350 }
  0xb6   : > { %v979_v51 = vpop.permute.xlu1 %365  ;;  %v981_v52 = vpop.permute.xlu0 %360 }
  0xba   : > { %v424_v61 = vpop.permute.xlu1 %423  ;;  %v419_v62 = vpop.permute.xlu0 %418 }
  0xbb   : > { %v498_v63 = vadd.f32 %v424_v61, %v370_v56  ;;  %v499_v0 = vadd.f32 %v424_v61, %v371_v57  ;;  %v496_v1 = vadd.f32 %v419_v62, %v368_v54  ;;  %v497_v2 = vadd.f32 %v419_v62, %v369_v55  ;;  %v262_v57 = vld [vmem:[%s968_s10 + $0xb0] sm:$0xff] }
  0xbc   : > { %v387_v54 = vmul.f32 %v956_v41, %v259_v36  ;;  %v384_v55 = vmul.f32 %v958_v42, %v256_v37  ;;  %v385_v56 = vmul.f32 %v958_v42, %v257_v38 }
  0xbd   : > { %530 = vst [vmem:[%s990_s19 + $0x10] sm:$0xff] %v498_v63  ;;  %531 = vst [vmem:[%s990_s19 + $0x18] sm:$0xff] %v499_v0 }
  0xbe   : > { %528 = vst [vmem:[%s990_s19] sm:$0xff] %v496_v1  ;;  %529 = vst [vmem:[%s990_s19 + $0x8] sm:$0xff] %v497_v2  ;;  %v434_v11 = vpop.permute.xlu1 %433  ;;  %v429_v12 = vpop.permute.xlu0 %428  ;;  %v390_v1 = vmul.f32 %v960_v43, %v262_v57  ;;  %v391_v2 = vmul.f32 %v960_v43, %v263_v58 }
  0xbf   : > { %v502_v13 = vadd.f32 %v434_v11, %v374_v5  ;;  %v503_v14 = vadd.f32 %v434_v11, %v375_v6  ;;  %v500_v15 = vadd.f32 %v429_v12, %v372_v3  ;;  %v501_v16 = vadd.f32 %v429_v12, %v373_v4  ;;  %v266_v5 = vld [vmem:[%s968_s10 + $0xd0] sm:$0xff]  ;;  %v267_v6 = vld [vmem:[%s968_s10 + $0xd8] sm:$0xff] }
  0xc0   : > { %v388_v3 = vmul.f32 %v962_v44, %v260_v59  ;;  %v389_v4 = vmul.f32 %v962_v44, %v261_v60 }
  0xc1   : > { %534 = vst [vmem:[%s990_s19 + $0x30] sm:$0xff] %v502_v13  ;;  %535 = vst [vmem:[%s990_s19 + $0x38] sm:$0xff] %v503_v14  ;;  %v394_v13 = vmul.f32 %v970_v45, %v266_v5  ;;  %v395_v14 = vmul.f32 %v970_v45, %v267_v6 }
  0xc2   : > { %532 = vst [vmem:[%s990_s19 + $0x20] sm:$0xff] %v500_v15  ;;  %533 = vst [vmem:[%s990_s19 + $0x28] sm:$0xff] %v501_v16  ;;  %v444_v25 = vpop.permute.xlu1 %443  ;;  %v439_v26 = vpop.permute.xlu0 %438  ;;  %v392_v15 = vmul.f32 %v972_v46, %v264_v7  ;;  %v393_v16 = vmul.f32 %v972_v46, %v265_v8 }
  0xc3   : > { %v506_v27 = vadd.f32 %v444_v25, %v378_v17  ;;  %v507_v28 = vadd.f32 %v444_v25, %v379_v18  ;;  %v504_v29 = vadd.f32 %v439_v26, %v376_v19  ;;  %v505_v30 = vadd.f32 %v439_v26, %v377_v20  ;;  %v270_v17 = vld [vmem:[%s968_s10 + $0xf0] sm:$0xff]  ;;  %v271_v18 = vld [vmem:[%s968_s10 + $0xf8] sm:$0xff]  ;;  %v268_v19 = vld [vmem:[%s968_s10 + $0xe0] sm:$0xff] }
  0xc4   : > { %v269_v20 = vld [vmem:[%s968_s10 + $0xe8] sm:$0xff]  ;;  %v398_v46 = vmul.f32 %v979_v51, %v270_v17  ;;  %v399_v26 = vmul.f32 %v979_v51, %v271_v18 }
  0xc5   : > { %538 = vst [vmem:[%s990_s19 + $0x50] sm:$0xff] %v506_v27  ;;  %539 = vst [vmem:[%s990_s19 + $0x58] sm:$0xff] %v507_v28  ;;  %v396_v27 = vmul.f32 %v981_v52, %v268_v19  ;;  %v397_v28 = vmul.f32 %v981_v52, %v269_v20 }
  0xc6   : > { %536 = vst [vmem:[%s990_s19 + $0x40] sm:$0xff] %v504_v29  ;;  %537 = vst [vmem:[%s990_s19 + $0x48] sm:$0xff] %v505_v30  ;;  %v454_v47 = vpop.permute.xlu1 %453  ;;  %v449_v39 = vpop.permute.xlu0 %448 }
  0xc7   : > { %v510_v48 = vadd.f32 %v454_v47, %v382_v31  ;;  %v511_v40 = vadd.f32 %v454_v47, %v383_v32  ;;  %v508_v49 = vadd.f32 %v449_v39, %v380_v33  ;;  %v509_v50 = vadd.f32 %v449_v39, %v381_v34 }
  0xc9   : > { %542 = vst [vmem:[%s990_s19 + $0x70] sm:$0xff] %v510_v48  ;;  %543 = vst [vmem:[%s990_s19 + $0x78] sm:$0xff] %v511_v40 }
  0xca   : > { %540 = vst [vmem:[%s990_s19 + $0x60] sm:$0xff] %v508_v49  ;;  %541 = vst [vmem:[%s990_s19 + $0x68] sm:$0xff] %v509_v50  ;;  %v464_v61 = vpop.permute.xlu1 %463  ;;  %v459_v41 = vpop.permute.xlu0 %458 }
  0xcb   : > { %v514_v62 = vadd.f32 %v464_v61, %v386_v53  ;;  %v515_v42 = vadd.f32 %v464_v61, %v387_v54  ;;  %v512_v63 = vadd.f32 %v459_v41, %v384_v55  ;;  %v513_v0 = vadd.f32 %v459_v41, %v385_v56 }
  0xcd   : > { %546 = vst [vmem:[%s990_s19 + $0x90] sm:$0xff] %v514_v62  ;;  %547 = vst [vmem:[%s990_s19 + $0x98] sm:$0xff] %v515_v42 }
  0xce   : > { %544 = vst [vmem:[%s990_s19 + $0x80] sm:$0xff] %v512_v63  ;;  %545 = vst [vmem:[%s990_s19 + $0x88] sm:$0xff] %v513_v0  ;;  %v474_v9 = vpop.permute.xlu1 %473  ;;  %v469_v43 = vpop.permute.xlu0 %468 }
  0xcf   : > { %v518_v10 = vadd.f32 %v474_v9, %v390_v1  ;;  %v519_v44 = vadd.f32 %v474_v9, %v391_v2  ;;  %v516_v11 = vadd.f32 %v469_v43, %v388_v3  ;;  %v517_v12 = vadd.f32 %v469_v43, %v389_v4 }
  0xd1   : > { %550 = vst [vmem:[%s990_s19 + $0xb0] sm:$0xff] %v518_v10  ;;  %551 = vst [vmem:[%s990_s19 + $0xb8] sm:$0xff] %v519_v44 }
  0xd2   : > { %548 = vst [vmem:[%s990_s19 + $0xa0] sm:$0xff] %v516_v11  ;;  %549 = vst [vmem:[%s990_s19 + $0xa8] sm:$0xff] %v517_v12  ;;  %v484_v21 = vpop.permute.xlu1 %483  ;;  %v479_v45 = vpop.permute.xlu0 %478 }
  0xd3   : > { %v522_v22 = vadd.f32 %v484_v21, %v394_v13  ;;  %v523_v23 = vadd.f32 %v484_v21, %v395_v14  ;;  %v520_v24 = vadd.f32 %v479_v45, %v392_v15  ;;  %v521_v25 = vadd.f32 %v479_v45, %v393_v16 }
  0xd5   : > { %554 = vst [vmem:[%s990_s19 + $0xd0] sm:$0xff] %v522_v22  ;;  %555 = vst [vmem:[%s990_s19 + $0xd8] sm:$0xff] %v523_v23 }
  0xd6   : > { %552 = vst [vmem:[%s990_s19 + $0xc0] sm:$0xff] %v520_v24  ;;  %553 = vst [vmem:[%s990_s19 + $0xc8] sm:$0xff] %v521_v25  ;;  %v494_v29 = vpop.permute.xlu1 %493  ;;  %v489_v30 = vpop.permute.xlu0 %488 }
  0xd7   : > { %v526_v51 = vadd.f32 %v494_v29, %v398_v46  ;;  %v527_v52 = vadd.f32 %v494_v29, %v399_v26  ;;  %v524_v31 = vadd.f32 %v489_v30, %v396_v27  ;;  %v525_v32 = vadd.f32 %v489_v30, %v397_v28 }
  0xd9   : > { %558 = vst [vmem:[%s990_s19 + $0xf0] sm:$0xff] %v526_v51  ;;  %559 = vst [vmem:[%s990_s19 + $0xf8] sm:$0xff] %v527_v52 }
  0xda   : > { %556 = vst [vmem:[%s990_s19 + $0xe0] sm:$0xff] %v524_v31  ;;  %557 = vst [vmem:[%s990_s19 + $0xe8] sm:$0xff] %v525_v32 }
  0xdb   : > { %773 = shalt.err (!%p770_p5)
}
  0xdc   : > { %s774_s6 = scalar_lea.hbm %s1068_s27, 4096  ;;  %s778_s9 = scalar_lea.hbm %s1127_s3, 8192 }
  0xdd   : > { %p775_p6 = scmp.ne.s32.totalorder %s1068_s27, %s774_s6  ;;  %p779_p10 = scmp.lt.u32.totalorder %s1068_s27, %s1127_s3 }
  0xde   : > { %p780_p11 = scmp.lt.u32.totalorder %s778_s9, %s774_s6  ;;  %p782_p13 = scmp.lt.u32.totalorder %s774_s6, %s1068_s27 }
  0xdf   : > { %p776_p7 = pnand %p775_p6, %p904_p4 }
  0xe0   : > { %p781_p12 = por %p780_p11, %p779_p10 }
  0xe1   : > { %p777_p9 = pneg %p776_p7 }
  0xe2   : > { %p783_p0 = por %p782_p13, %p781_p12 }
  0xe4   : > { %p784_p1 = pnand %p783_p0, %p777_p9 }
  0xe6   : > { %787 = shalt.err (!%p784_p1)
}
  0xe7   : > { %s842_s18 = smov 256   ;;  %s843_s19 = smov 16  }
  0xe8   : > { %700 = dma.vmem_to_hbm [thread:$0]  (%p904_p4), %s1070_s23, 4096, %s1068_s27, %s1078_s28, %s842_s18, %s842_s18, %s843_s19  }
  0xe9 PF: > { %p706_p2 = scmp.ge.s32.totalorder %s838_s17, 2  ;;  %s591_s21 = sand.u32 1, %s818_s12  }
  0xea   : > { %s592_s15 = scalar_lea.sflag [#allocation3], %s591_s21 }
  0xeb   : > { %p703_p3 = pnand %p706_p2, %p911_p8 }
  0xed   : > { %813 = dma.done.wait (!%p703_p3), %s592_s15, 4096  }
  0xee   : > { %815 = vsyncadd (!%p703_p3), %s592_s15, 4294963200  ;;  %s16_s17 = sadd.s32 1, %s838_s17   ;;  %s1130_s12 = smov %s822_s13 }
  0xef   : > { %p13_p5 = scmp.ge.s32.totalorder %s16_s17, 4   ;;  %s1131_s13 = smov %s826_s14 }
  0xf0   : > { %s1132_s14 = smov %s917_s25  ;;  %s1133_s15 = smov %s834_s16 }
  0xf1   : > { %s1134_s16 = smov %s1136_s20  ;;  %15 = sbr.rel (!%p13_p5) target bundleno = 4 (0x4), region = 73 }
  0xf8   :  { %597 = vsyncpa [#allocation3], 1 }
  0xf9   :  { %599 = vsyncpa [#allocation3 + $0x1], 1 }

</bundles_post_ra>
